<compile_context>
chip_gen: v7x
topology: tpu7x:2x2x1
jax: 0.10.0
libtpu: 0.0.40
codegen_flags: <defaults>
</compile_context>

<pallas_src>
import functools

import jax
import jax.numpy as jnp
from jax import lax
from jax.experimental import pallas as pl
from jax.experimental.pallas import tpu as pltpu


def _round_up(x, m):
    return ((x + m - 1) // m) * m


def _round_down(x, m):
    return (x // m) * m


def _vmem_capacity_bytes():
    """Generation-aware VMEM capacity with a conservative (v7x) fallback."""
    try:
        cap = int(pltpu.get_tpu_info().vmem_capacity_bytes)
        if cap > 0:
            return cap
    except Exception:
        pass
    return 64 << 20  # v7x per-TensorCore VMEM (safe lower bound everywhere)


def _focal_loss_kernel(logits_ref, targets_ref, out_ref, *, alpha, gamma,
                       n_rows, exp_dtype):
    logits = logits_ref[...].astype(jnp.float32)          # [tile_n, C]
    tgt = targets_ref[...]                                 # [tile_n, 1] int32
    tn, c = logits.shape

    # cross_entropy(reduction='none') via numerically stable log-sum-exp.
    row_max = jnp.max(logits, axis=-1, keepdims=True)      # [tile_n, 1]
    shifted = logits - row_max                             # [tile_n, C], <= 0
    # Bulk exp optionally in bf16 (2x EUP rate on v6e/v7x); accumulate in f32.
    sum_exp = jnp.sum(jnp.exp(shifted.astype(exp_dtype)).astype(jnp.float32),
                      axis=-1, keepdims=True)
    lse = jnp.log(sum_exp)                                 # [tile_n, 1]

    # Gather shifted[row, target[row]] via one-hot compare (no logp temp).
    col_ids = lax.broadcasted_iota(jnp.int32, (tn, c), 1)
    tgt_shifted = jnp.sum(jnp.where(col_ids == tgt, shifted, 0.0),
                          axis=-1, keepdims=True)
    ce = lse - tgt_shifted                                 # [tile_n, 1], >= 0

    # Focal reweighting.
    pt = jnp.exp(-ce)                                      # only tile_n values
    one_minus_pt = jnp.maximum(1.0 - pt, 0.0)              # guard fp rounding
    g = float(gamma)
    if g == int(g) and 0 <= int(g) <= 8:
        # Integer gamma -> plain VPU multiplies (no exp/log pow on the EUP).
        w = jnp.ones_like(one_minus_pt)
        for _ in range(int(g)):
            w = w * one_minus_pt
    else:
        w = jnp.power(one_minus_pt, g)
    focal = alpha * w * ce                                 # [tile_n, 1]

    # Mask rows past the true N (final partial block reads padded garbage).
    row_ids = pl.program_id(0) * tn + lax.broadcasted_iota(jnp.int32, (tn, 1), 0)
    focal = jnp.where(row_ids < n_rows, focal, 0.0)

    # Per-tile partial sum, written through a lane-dense (8, 128) block.
    # Each of the 1024 lanes holds partial/1024, so a plain sum of the output
    # array recovers the exact per-tile partial (power-of-two scaling).
    partial = jnp.sum(focal, axis=0, keepdims=True) * (1.0 / (8.0 * 128.0))
    out_ref[...] = jnp.broadcast_to(partial, (8, 128))


def focal_loss(outputs, targets, alpha=0.25, gamma=2.0, exp_dtype=None):
    """Pallas TPU implementation of FocalLoss.forward.

    outputs: [N, C] float logits (any float dtype; upcast to f32 in-kernel)
    targets: [N] integer class indices
    returns: scalar float32
    """
    n, c = outputs.shape
    itemsize = jnp.dtype(outputs.dtype).itemsize

    if exp_dtype is None:
        # bf16 EUP exp only when the inputs are already bf16 (no extra
        # precision loss vs. the data); f32 inputs keep exact f32 exp.
        exp_dtype = jnp.bfloat16 if outputs.dtype == jnp.bfloat16 else jnp.float32

    # ---- generation-aware tile sizing (grow AND shrink) ----------------------
    row_align = max(8, 32 // max(itemsize, 1))   # packed sublane multiple
    c_pad = _round_up(c, 128)                    # lane padding in VMEM / vregs

    vmem_cap = _vmem_capacity_bytes()
    budget = min((vmem_cap * 2) // 5, 44 << 20)  # ~40% of VMEM, hard cap 44 MiB

    # Live VMEM bytes per tile row:
    #   2x double-buffered logits block (lanes padded C -> 128)
    #   2x double-buffered (tile_n, 1) int32 targets block (lane-padded to 128)
    #   ~3x f32 [tile_n, C_pad] kernel temporaries (shifted / exp / one-hot-where)
    bytes_per_row = 2 * c_pad * itemsize + 2 * 128 * 4 + 3 * c_pad * 4

    tile_n = max(row_align, budget // bytes_per_row)
    # Keep >= ~4 grid blocks: pipelining has something to overlap and
    # "parallel" can shard blocks across v7x's two TensorCores.
    tile_n = min(tile_n, _round_up(pl.cdiv(n, 4), row_align))
    tile_n = max(row_align, _round_down(tile_n, row_align))
    tile_n = min(tile_n, _round_up(n, row_align))

    grid = (pl.cdiv(n, tile_n),)
    num_tiles = grid[0]

    est = tile_n * bytes_per_row + (2 << 20)
    vmem_limit = int(min(max(3 * est // 2, 32 << 20), (vmem_cap * 4) // 5))

    targets_2d = targets.astype(jnp.int32).reshape(n, 1)

    partials = pl.pallas_call(
        functools.partial(_focal_loss_kernel, alpha=float(alpha),
                          gamma=float(gamma), n_rows=int(n),
                          exp_dtype=exp_dtype),
        out_shape=jax.ShapeDtypeStruct((8, 128 * num_tiles), jnp.float32),
        grid=grid,
        in_specs=[
            pl.BlockSpec((tile_n, c), lambda i: (i, 0)),   # logits row tile
            pl.BlockSpec((tile_n, 1), lambda i: (i, 0)),   # targets row tile
        ],
        out_specs=pl.BlockSpec((8, 128), lambda i: (0, i)),  # lane-dense partials
        compiler_params=pltpu.CompilerParams(
            dimension_semantics=("parallel",),
            vmem_limit_bytes=vmem_limit,
        ),
    )(outputs, targets_2d)

    # Tiny final reduction (num_tiles * 1024 elements); divide by the true N.
    return jnp.sum(partials) / jnp.float32(n)


def _focal_loss_ref(outputs, targets, alpha=0.25, gamma=2.0):
    # Pure-JAX reference mirroring torch.nn.functional.cross_entropy semantics.
    logp = jax.nn.log_softmax(outputs.astype(jnp.float32), axis=-1)
    ce = -jnp.take_along_axis(logp, targets[:, None].astype(jnp.int32), axis=-1)[:, 0]
    pt = jnp.exp(-ce)
    return jnp.mean(alpha * (1.0 - pt) ** gamma * ce)


if __name__ == "__main__":
    key = jax.random.PRNGKey(0)
    k_logits, k_tgt = jax.random.split(key)

    # Primary case: f32 logits, N divisible by the tile.
    N, C = 64, 32
    outputs = jax.random.normal(k_logits, (N, C), dtype=jnp.float32)
    targets = jax.random.randint(k_tgt, (N,), 0, C, dtype=jnp.int32)

    loss = jax.block_until_ready(focal_loss(outputs, targets, alpha=0.25, gamma=2.0))
    ref = _focal_loss_ref(outputs, targets, alpha=0.25, gamma=2.0)
    assert jnp.allclose(loss, ref, rtol=1e-5, atol=1e-6), (loss, ref)

    # Ragged case: exercises the in-kernel padded-row mask.
    N2 = 50
    out2 = jax.random.normal(k_logits, (N2, C), dtype=jnp.float32)
    tgt2 = jax.random.randint(k_tgt, (N2,), 0, C, dtype=jnp.int32)
    loss2 = jax.block_until_ready(focal_loss(out2, tgt2))
    ref2 = _focal_loss_ref(out2, tgt2)
    assert jnp.allclose(loss2, ref2, rtol=1e-5, atol=1e-6), (loss2, ref2)

    # bf16 logits: exercises the bf16-EUP exp path (loose tolerance).
    out3 = out2.astype(jnp.bfloat16)
    loss3 = jax.block_until_ready(focal_loss(out3, tgt2))
    ref3 = _focal_loss_ref(out3.astype(jnp.float32), tgt2)
    assert jnp.allclose(loss3, ref3, rtol=5e-2, atol=5e-3), (loss3, ref3)

    print("KERNEL_OK")
</pallas_src>

<mosaic_0001>
module attributes {stable_mosaic.version = 11 : i64} {
  func.func @_focal_loss_kernel(%arg0: i32, %arg1: memref<16x32xf32, #tpu.memory_space<vmem>>, %arg2: memref<16x1xi32, #tpu.memory_space<vmem>>, %arg3: memref<8x128xf32, #tpu.memory_space<vmem>>) attributes {dimension_semantics = [#tpu.dimension_semantics<parallel>], iteration_bounds = array<i64: 4>, scalar_prefetch = 0 : i64, scratch_operands = 0 : i64, tpu.core_type = #tpu.core_type<tc>, window_params = [{transform_indices = @transform_0, window_bounds = array<i64: 16, 32>}, {transform_indices = @transform_1, window_bounds = array<i64: 16, 1>}, {transform_indices = @transform_2, window_bounds = array<i64: 8, 128>}]} {
    %c0 = arith.constant 0 : index
    %c0_0 = arith.constant 0 : index
    %0 = vector.load %arg1[%c0, %c0_0] : memref<16x32xf32, #tpu.memory_space<vmem>>, vector<16x32xf32>
    %c0_1 = arith.constant 0 : index
    %c0_2 = arith.constant 0 : index
    %1 = vector.load %arg2[%c0_1, %c0_2] : memref<16x1xi32, #tpu.memory_space<vmem>>, vector<16x1xi32>
    %cst = arith.constant dense<0xFF800000> : vector<16xf32>
    %2 = vector.multi_reduction <maximumf>, %0, %cst [1] : vector<16x32xf32> to vector<16xf32>
    %3 = vector.shape_cast %2 : vector<16xf32> to vector<16x1xf32>
    %4 = vector.broadcast %3 : vector<16x1xf32> to vector<16x32xf32>
    %5 = arith.subf %0, %4 : vector<16x32xf32>
    %6 = math.exp %5 : vector<16x32xf32>
    %cst_3 = arith.constant dense<0.000000e+00> : vector<16xf32>
    %7 = vector.multi_reduction <add>, %6, %cst_3 [1] : vector<16x32xf32> to vector<16xf32>
    %8 = vector.shape_cast %7 : vector<16xf32> to vector<16x1xf32>
    %9 = math.log %8 : vector<16x1xf32>
    %10 = tpu.iota {dimensions = array<i32: 1>} : vector<16x32xi32>
    %11 = vector.broadcast %1 : vector<16x1xi32> to vector<16x32xi32>
    %12 = arith.cmpi eq, %10, %11 : vector<16x32xi32>
    %cst_4 = arith.constant 0.000000e+00 : f32
    %13 = vector.broadcast %cst_4 : f32 to vector<16x32xf32>
    %14 = arith.select %12, %5, %13 : vector<16x32xi1>, vector<16x32xf32>
    %cst_5 = arith.constant dense<0.000000e+00> : vector<16xf32>
    %15 = vector.multi_reduction <add>, %14, %cst_5 [1] : vector<16x32xf32> to vector<16xf32>
    %16 = vector.shape_cast %15 : vector<16xf32> to vector<16x1xf32>
    %17 = arith.subf %9, %16 : vector<16x1xf32>
    %cst_6 = arith.constant 0.000000e+00 : f32
    %18 = vector.broadcast %cst_6 : f32 to vector<16x1xf32>
    %19 = arith.subf %18, %17 : vector<16x1xf32>
    %20 = math.exp %19 : vector<16x1xf32>
    %cst_7 = arith.constant 1.000000e+00 : f32
    %21 = vector.broadcast %cst_7 : f32 to vector<16x1xf32>
    %22 = arith.subf %21, %20 : vector<16x1xf32>
    %cst_8 = arith.constant 0.000000e+00 : f32
    %23 = vector.broadcast %cst_8 : f32 to vector<16x1xf32>
    %24 = arith.maximumf %22, %23 : vector<16x1xf32>
    %cst_9 = arith.constant 1.000000e+00 : f32
    %25 = vector.broadcast %cst_9 : f32 to vector<16x1xf32>
    %26 = arith.mulf %25, %24 : vector<16x1xf32>
    %27 = arith.mulf %26, %24 : vector<16x1xf32>
    %cst_10 = arith.constant 2.500000e-01 : f32
    %28 = vector.broadcast %cst_10 : f32 to vector<16x1xf32>
    %29 = arith.mulf %28, %27 : vector<16x1xf32>
    %30 = arith.mulf %29, %17 : vector<16x1xf32>
    %c16_i32 = arith.constant 16 : i32
    %31 = arith.muli %arg0, %c16_i32 : i32
    %32 = tpu.iota {dimensions = array<i32: 0>} : vector<16x1xi32>
    %33 = vector.broadcast %31 : i32 to vector<16x1xi32>
    %34 = arith.addi %33, %32 : vector<16x1xi32>
    %c64_i32 = arith.constant 64 : i32
    %35 = vector.broadcast %c64_i32 : i32 to vector<16x1xi32>
    %36 = arith.cmpi slt, %34, %35 : vector<16x1xi32>
    %cst_11 = arith.constant 0.000000e+00 : f32
    %37 = vector.broadcast %cst_11 : f32 to vector<16x1xf32>
    %38 = arith.select %36, %30, %37 : vector<16x1xi1>, vector<16x1xf32>
    %cst_12 = arith.constant dense<0.000000e+00> : vector<1xf32>
    %39 = vector.multi_reduction <add>, %38, %cst_12 [0] : vector<16x1xf32> to vector<1xf32>
    %40 = vector.shape_cast %39 : vector<1xf32> to vector<1x1xf32>
    %cst_13 = arith.constant 9.765625E-4 : f32
    %41 = vector.broadcast %cst_13 : f32 to vector<1x1xf32>
    %42 = arith.mulf %40, %41 : vector<1x1xf32>
    %43 = vector.shape_cast %42 : vector<1x1xf32> to vector<1x1xf32>
    %44 = vector.broadcast %43 : vector<1x1xf32> to vector<8x128xf32>
    %c0_14 = arith.constant 0 : index
    %c0_15 = arith.constant 0 : index
    %45 = vector.load %arg3[%c0_14, %c0_15] : memref<8x128xf32, #tpu.memory_space<vmem>>, vector<8x128xf32>
    tpu.vector_store %arg3[%c0_14, %c0_15], %44 {strides = array<i32>} : memref<8x128xf32, #tpu.memory_space<vmem>>, vector<8x128xf32>,
    return
  }
  func.func @transform_0(%arg0: i32) -> (i32, i32) {
    %c0_i32 = arith.constant 0 : i32
    %c0_i32_0 = arith.constant 0 : i32
    return %arg0, %c0_i32 : i32, i32
  }
  func.func @transform_1(%arg0: i32) -> (i32, i32) {
    %c0_i32 = arith.constant 0 : i32
    %c0_i32_0 = arith.constant 0 : i32
    return %arg0, %c0_i32 : i32, i32
  }
  func.func @transform_2(%arg0: i32) -> (i32, i32) {
    %c0_i32 = arith.constant 0 : i32
    %c0_i32_0 = arith.constant 0 : i32
    return %c0_i32, %arg0 : i32, i32
  }
}

</mosaic_0001>

<bundles_post_ra>
// kernel: tpu_custom_call.1
= control target key start
LH: loop header
LB: loop body
LE: loop exit
PB: predicated region body
PF: predicated region fallthrough
CT: control target
= control target key end

     0   :  { %7 = vsyncpa [#allocation3], 0  ;;  %s592_s0 = inlined_call_operand.vmem [shape: f32[64,32], index: 0, kind: input, shape index: {}]   ;;  %s593_s1 = inlined_call_operand.vmem [shape: s32[64,1], index: 1, kind: input, shape index: {}]   ;;  %s594_s2 = inlined_call_operand.hbm [shape: f32[8,512], index: 2, kind: output, shape index: {}]  }
   0x1   :  { %9 = vsyncpa [#allocation3 + $0x1], 0  ;;  %s483_s9 = smov 0   ;;  %s485_s10 = smov 0  }
   0x2   :  { %s487_s11 = smov 0   ;;  %s489_s12 = smov 0  }
   0x3 LB: > { %s504_s13 = sadd.s32 4294967295, %s464_s12   ;;  %s334_s14 = sadd.s32 4294967294, %s464_s12   ;;  %s464_s12 = sphi %s489_s12, %s600_s12   ;;  %s460_s11 = sphi %s487_s11, %s599_s11   ;;  %s456_s10 = sphi %s485_s10, %s598_s10   ;;  %s452_s9 = sphi %s483_s9, %s597_s9  }
   0x4   : > { %s508_s15 = sadd.s32 1, %s464_s12   ;;  %s74_s16 = sadd.s32 1, %s460_s11 }
   0x5   : > { %s71_s17 = ssub.s32 %s464_s12, %s508_s15  ;;  %p84_p0 = scmp.ne.s32.totalorder %s460_s11, %s456_s10 }
   0x6   : > { %p72_p1 = scmp.eq.s32.totalorder %s71_s17, 0  ;;  %p85_p2 = scmp.eq.s32.totalorder %s504_s13, 3 }
   0x7   : > { %p90_p3 = scmp.ne.s32.totalorder %s456_s10, %s452_s9  ;;  %p91_p4 = scmp.eq.s32.totalorder %s334_s14, 3 }
   0x8   : > { %s519_s18 = scalar_select %p72_p1, %s460_s11, %s74_s16  }
   0x9   : > { %p521_p5 = por %p85_p2, %p84_p0  ;;  %p525_p6 = por %p91_p4, %p90_p3 }
   0xa   : > { %p337_p7 = scmp.ge.s32.totalorder %s464_s12, 1  ;;  %p127_p8 = scmp.lt.s32.totalorder %s464_s12, 5 }
   0xc   : > { %p128_p9 = pnand %p337_p7, %p127_p8 }
   0xd   : > { %s339_s21 = sshll.u32 (!%p128_p9), %s504_s13, 1  ;;  %v466_v0 = vmov (!%p128_p9), 0   ;;  %vm170_vm0 = vcmask (!%p128_p9), 261120   ;;  %v193_v12 = vlaneseq (!%p128_p9)  ;;  %s343_s29 = sshll.u32 (!%p128_p9), %s504_s13, 4 }
   0xe   : > { %131 = sbr.rel (%p128_p9) target bundleno = 401 (0x191), region = 28  ;;  %p155_p10 = scmp.lt.s32.totalorder (!%p128_p9), %s339_s21, 7  ;;  %388 = vset.pattern.permute.xlu1 (!%p128_p9), %v466_v0  ;;  %389 = vset.pattern.permute.xlu0 (!%p128_p9), %v466_v0  ;;  %v233_v45 = vstv (!%p128_p9), %s343_s29 }
   0xf   : > { %v194_v15 = vand.u32 (!%p128_p9), 127, %v193_v12  ;;  %v231_v41 = vshrl.u32 (!%p128_p9), %v193_v12, 7  ;;  %s151_s30 = sand.u32 (!%p128_p9), 1, %s456_s10   ;;  %s345_s4 = sshll.u32 (!%p128_p9), %s504_s13, 7 }
  0x10   : > { %s338_s3 = sshll.u32 (!%p128_p9), %s151_s30, 3  ;;  %s550_s14 = scalar_lea.hbm (!%p128_p9), %s594_s2, %s345_s4 }
  0x11   : > { %v232_v44 = vadd.s32 (!%p128_p9), 8, %v231_v41  ;;  %v234_v50 = vadd.s32 (!%p128_p9), %v233_v45, %v231_v41  ;;  %s153_s5 = scalar_lea.vmem (!%p128_p9), [#allocation2], %s338_s3  ;;  %s250_s16 = scalar_lea.sflag (!%p128_p9), [#allocation3], %s151_s30 }
  0x12   : > { %s263_s6 = sshll.u32 (!%p128_p9), %s153_s5, 4  ;;  %s467_s13 = smov (!%p128_p9), [#allocation2]   ;;  %s552_s6 = int_to_ptr.vmem [resolvable:$true] %s263_s6 }
  0x13   : > { %v235_v51 = vadd.s32 (!%p128_p9), %v233_v45, %v232_v44  ;;  %vm236_vm3 = vcmp.lt.s32.totalorder (!%p128_p9), %v234_v50, 64  ;;  %s402_s17 = scalar_lea.vmem (!%p128_p9), %s552_s6, 128 }
  0x14   : > { %p403_p11 = scmp.ne.s32.totalorder (!%p128_p9), %s552_s6, %s402_s17 }
  0x15   : > { %s602_s21 = smov (!%p155_p10, %s339_s21), 7  ;;  %vm237_vm4 = vcmp.lt.s32.totalorder %v235_v51, 64 }
  0x16   : > { %s340_s22 = sshll.u32 %s602_s21, 3  ;;  %p404_p12 = pnand %p403_p11, %p521_p5 }
  0x17   : > { %s158_s25 = scalar_lea.vmem %s592_s0, %s340_s22  ;;  %s164_s28 = scalar_lea.vmem %s593_s1, %s340_s22 }
  0x18   : > { %v166_v1 = vld [vmem:[%s158_s25] sm:$0xff]  ;;  %v167_v2 = vld [vmem:[%s158_s25 + $0x8] sm:$0xff]  ;;  %p405_p13 = pneg %p404_p12  ;;  %s406_s21 = sshll.u32 %s467_s13, 4  ;;  %s407_s21 = int_to_ptr.vmem [resolvable:$false] %s406_s21 }
  0x19   : > { %v168_v3 = vld [vmem:[%s164_s28] sm:$0xff]  ;;  %v171_v4 = vsel %vm170_vm0, %v166_v1, -inf  ;;  %v169_v5 = vld [vmem:[%s164_s28 + $0x8] sm:$0xff]  ;;  %v174_v6 = vsel %vm170_vm0, %v167_v2, -inf  ;;  %s408_s22 = scalar_lea.vmem %s407_s21, 256  ;;  %p409_p0 = scmp.lt.s32.totalorder %s552_s6, %s407_s21 }
  0x1a   : > { %196 = vperm.xlu1 %388, %v168_v3   ;;  %172 = vmax.xlane.f32.xlu0 %v171_v4  ;;  %p410_p1 = scmp.lt.s32.totalorder %s408_s22, %s402_s17 }
  0x1c   : > { %p411_p2 = por %p410_p1, %p409_p0 }
  0x1e   : > { %199 = vperm.xlu1 %388, %v169_v5   ;;  %175 = vmax.xlane.f32.xlu0 %v174_v6  ;;  %p412_p3 = pnand %p411_p2, %p405_p13 }
  0x99   : > { %v197_v14 = vpop.permute.xlu1 %196 }
  0x9a   : > { %vm201_vm1 = vcmp.eq.s32.totalorder %v194_v15, %v197_v14 }
  0x9d   : > { %v200_v17 = vpop.permute.xlu1 %199 }
  0x9e   : > { %vm202_vm2 = vcmp.eq.s32.totalorder %v194_v15, %v200_v17 }
  0xa7   : > { %v173_v7 = vpop.xlane.xlu0 %172 }
  0xa8   : > { %v177_v8 = vsub.f32 %v166_v1, %v173_v7 }
  0xaa   : > { %v179_v9 = vmul.f32 1.442695, %v177_v8  ;;  %v203_v19 = vsel %vm201_vm1, %v177_v8, 0.0 }
  0xab   : > { %v176_v10 = vpop.xlane.xlu0 %175  ;;  %v205_v21 = vsel %vm170_vm0, %v203_v19, 0.0 }
  0xac   : > { %390 = vpow2.f32 %v179_v9  ;;  %v178_v11 = vsub.f32 %v167_v2, %v176_v10 }
  0xae   : > { %v181_v13 = vmul.f32 1.442695, %v178_v11  ;;  %v204_v23 = vsel %vm202_vm2, %v178_v11, 0.0 }
  0xaf   : > { %v208_v24 = vsel %vm170_vm0, %v204_v23, 0.0 }
  0xb0   : > { %392 = vpow2.f32 %v181_v13 }
  0xb6   : > { %v391_v16 = vpop.eup %390 }
  0xb7   : > { %v183_v18 = vsel %vm170_vm0, %v391_v16, 0.0 }
  0xb8   : > { %184 = vadd.xlane.f32.xlu0 %v183_v18 }
  0xba   : > { %v393_v20 = vpop.eup %392 }
  0xbb   : > { %v186_v22 = vsel %vm170_vm0, %v393_v20, 0.0 }
  0xbc   : > { %206 = vadd.xlane.f32.xlu0 %v205_v21  ;;  %187 = vadd.xlane.f32.xlu1 %v186_v22 }
  0xc0   : > { %209 = vadd.xlane.f32.xlu0 %v208_v24 }
 0x145   : > { %v185_v25 = vpop.xlane.xlu0 %184 }
 0x146   : > { %394 = vlog2.f32 %v185_v25 }
 0x149   : > { %v188_v26 = vpop.xlane.xlu1 %187  ;;  %v207_v28 = vpop.xlane.xlu0 %206 }
 0x14a   : > { %396 = vlog2.f32 %v188_v26 }
 0x14d   : > { %v210_v34 = vpop.xlane.xlu0 %209 }
 0x150   : > { %v395_v27 = vpop.eup %394 }
 0x151   : > { %v190_v29 = vmul.f32 0.6931472, %v395_v27 }
 0x153   : > { %v211_v30 = vsub.f32 %v190_v29, %v207_v28 }
 0x154   : > { %v397_v31 = vpop.eup %396 }
 0x155   : > { %v213_v32 = vsub.f32 0.0, %v211_v30  ;;  %v192_v33 = vmul.f32 0.6931472, %v397_v31 }
 0x157   : > { %v215_v35 = vmul.f32 1.442695, %v213_v32  ;;  %v212_v36 = vsub.f32 %v192_v33, %v210_v34 }
 0x159   : > { %398 = vpow2.f32 %v215_v35  ;;  %v214_v37 = vsub.f32 0.0, %v212_v36 }
 0x15b   : > { %v217_v38 = vmul.f32 1.442695, %v214_v37 }
 0x15d   : > { %400 = vpow2.f32 %v217_v38 }
 0x163   : > { %v399_v39 = vpop.eup %398 }
 0x164   : > { %v219_v40 = vsub.f32 1.0, %v399_v39 }
 0x166   : > { %v221_v42 = vmax.f32 %v219_v40, 0.0 }
 0x167   : > { %v401_v43 = vpop.eup %400 }
 0x168   : > { %v223_v46 = vmul.f32 %v221_v42, %v221_v42  ;;  %v220_v47 = vsub.f32 1.0, %v401_v43 }
 0x16a   : > { %v225_v48 = vmul.f32 0.25, %v223_v46  ;;  %v222_v49 = vmax.f32 %v220_v47, 0.0 }
 0x16c   : > { %v224_v52 = vmul.f32 %v222_v49, %v222_v49  ;;  %v227_v53 = vmul.f32 %v225_v48, %v211_v30 }
 0x16e   : > { %v226_v54 = vmul.f32 0.25, %v224_v52  ;;  %v238_v56 = vsel %vm236_vm3, %v227_v53, 0.0 }
 0x170   : > { %v228_v55 = vmul.f32 %v226_v54, %v212_v36 }
 0x172   : > { %v239_v57 = vsel %vm237_vm4, %v228_v55, 0.0 }
 0x173   : > { %v240_v58 = vadd.f32 %v239_v57, %v238_v56 }
 0x175   : > { %v241_v59 = vrot.slane %v240_v58, 4 }
 0x177   : > { %v242_v60 = vadd.f32 %v241_v59, %v240_v58 }
 0x179   : > { %v243_v61 = vrot.slane %v242_v60, 2 }
 0x17b   : > { %v244_v62 = vadd.f32 %v243_v61, %v242_v60 }
 0x17d   : > { %v245_v63 = vrot.slane %v244_v62, 1 }
 0x17f   : > { %v246_v0 = vadd.f32 %v245_v63, %v244_v62 }
 0x181   : > { %v247_v1 = vmul.f32 0.0009765625, %v246_v0 }
 0x183   : > { %248 = vst [vmem:[%s153_s5] sm:$0xff] %v247_v1 }
 0x184   : > { %415 = shalt.err (!%p412_p3)
}
 0x185   : > { %s416_s23 = scalar_lea.hbm %s550_s14, 128  ;;  %s420_s26 = scalar_lea.hbm %s594_s2, 512 }
 0x186   : > { %p417_p4 = scmp.ne.s32.totalorder %s550_s14, %s416_s23  ;;  %p421_p9 = scmp.lt.u32.totalorder %s550_s14, %s594_s2 }
 0x187   : > { %p422_p10 = scmp.lt.u32.totalorder %s420_s26, %s416_s23  ;;  %p424_p12 = scmp.lt.u32.totalorder %s416_s23, %s550_s14 }
 0x188   : > { %p418_p7 = pnand %p417_p4, %p521_p5 }
 0x189   : > { %p423_p11 = por %p422_p10, %p421_p9 }
 0x18a   : > { %p419_p8 = pneg %p418_p7 }
 0x18b   : > { %p425_p13 = por %p424_p12, %p423_p11 }
 0x18d   : > { %p426_p0 = pnand %p425_p13, %p419_p8 }
 0x18f   : > { %429 = shalt.err (!%p426_p0)
}
 0x190   : > { %348 = dma.vmem_to_hbm [thread:$0]  (%p521_p5), %s552_s6, 128, %s550_s14, %s250_s16  }
 0x191 PF: > { %p354_p1 = scmp.ge.s32.totalorder %s464_s12, 2  ;;  %s275_s29 = sand.u32 1, %s452_s9  }
 0x192   : > { %s276_s30 = scalar_lea.sflag [#allocation3], %s275_s29 }
 0x193   : > { %p351_p2 = pnand %p354_p1, %p525_p6 }
 0x195   : > { %447 = dma.done.wait (!%p351_p2), %s276_s30, 128  }
 0x196   : > { %449 = vsyncadd (!%p351_p2), %s276_s30, 4294967168  ;;  %p12_p3 = scmp.ge.s32.totalorder %s508_s15, 6   ;;  %s597_s9 = smov %s456_s10 }
 0x197   : > { %s598_s10 = smov %s460_s11  ;;  %s599_s11 = smov %s519_s18 }
 0x198   : > { %s600_s12 = smov %s508_s15  ;;  %14 = sbr.rel (!%p12_p3) target bundleno = 3 (0x3), region = 66 }
 0x19f   :  { %281 = vsyncpa [#allocation3], 1 }
 0x1a0   :  { %283 = vsyncpa [#allocation3 + $0x1], 1 }

</bundles_post_ra>
